<compile_context>
chip_gen: v6e
topology: v6e:2x2x1
jax: 0.10.0
libtpu: 0.0.40
codegen_flags: <defaults>
</compile_context>

<pallas_src>
import functools

import jax
import jax.numpy as jnp
from jax.experimental import pallas as pl
from jax.experimental.pallas import tpu as pltpu

NUM_INPUTS = 784     # 1 * 28 * 28
NUM_OUTPUTS = 10
TILE_B_MAX = 3072    # fits v7x 64 MiB VMEM with 3 x-buffers (padded sizes)
_LANE = 128


def _round_up(n, m):
    return ((n + m - 1) // m) * m


def _linear_kernel(x_ref, wt_ref, b_ref, o_ref, *, precision):
    # x_ref : (tb, 784)   VMEM  (streamed per grid step, multi-buffered)
    # wt_ref: (784, 10)   VMEM  (resident across all steps)
    # b_ref : (1, 10)     VMEM  (resident across all steps)
    # o_ref : (tb, 10)    VMEM
    acc = jnp.dot(x_ref[...], wt_ref[...],
                  preferred_element_type=jnp.float32,
                  precision=precision)
    o_ref[...] = (acc + b_ref[...]).astype(o_ref.dtype)


def linear_net_forward(x, w, b, *, tile_b=TILE_B_MAX,
                       compute_dtype=jnp.float32, precision=None):
    """x: (B, C, H, W); w: (10, 784); b: (10,)  ->  (B, 10) float32."""
    B = x.shape[0]
    x2d = x.reshape(B, -1)                       # matches PyTorch .view(B, -1)
    assert x2d.shape[1] == NUM_INPUTS
    wt = w.T.astype(compute_dtype)               # (784, 10)
    b2d = b.reshape(1, NUM_OUTPUTS).astype(jnp.float32)
    x2d = x2d.astype(compute_dtype)
    itemsize = jnp.dtype(compute_dtype).itemsize

    # Tile size: sublane-aligned (multiple of 8), capped at tile_b, and chosen
    # so the grid has >= 2 steps whenever the batch allows it (v7x: 2 TCs).
    tb = min(tile_b, max(8, _round_up(pl.cdiv(B, 2), 8)))
    num_steps = pl.cdiv(B, tb)

    # Triple-buffer x only when the grid is long enough to benefit.
    n_x_buffers = 3 if num_steps >= 3 else 2
    x_spec_kwargs = {}
    if n_x_buffers > 2:
        x_spec_kwargs["pipeline_mode"] = pl.Buffered(n_x_buffers)

    # VMEM budget from padded block sizes (+ margin for bias / internal scratch).
    x_block_bytes = tb * _round_up(NUM_INPUTS, _LANE) * itemsize      # 784 -> 896 lanes
    out_block_bytes = tb * _LANE * 4                                  # 10 -> 128 lanes, f32
    wt_bytes = _round_up(NUM_INPUTS, 8) * _LANE * itemsize
    vmem_bytes = (n_x_buffers * x_block_bytes + 2 * out_block_bytes
                  + 2 * wt_bytes + (2 << 20))
    vmem_bytes = max(vmem_bytes, 32 << 20)   # never below the largest default scoped limit
    vmem_bytes = min(vmem_bytes, 60 << 20)   # headroom under v7x's 64 MiB physical VMEM

    cost = pl.CostEstimate(
        flops=2 * B * NUM_INPUTS * NUM_OUTPUTS,
        transcendentals=0,
        bytes_accessed=(B * NUM_INPUTS * itemsize
                        + NUM_INPUTS * NUM_OUTPUTS * itemsize
                        + NUM_OUTPUTS * 4
                        + B * NUM_OUTPUTS * 4),
    )

    out = pl.pallas_call(
        functools.partial(_linear_kernel, precision=precision),
        out_shape=jax.ShapeDtypeStruct((B, NUM_OUTPUTS), jnp.float32),
        grid=(num_steps,),
        in_specs=[
            # x: stream batch tiles (multi-buffered when grid is long enough).
            pl.BlockSpec((tb, NUM_INPUTS), lambda i: (i, 0), **x_spec_kwargs),
            # W^T: constant block -> VMEM-resident across all steps.
            pl.BlockSpec((NUM_INPUTS, NUM_OUTPUTS), lambda i: (0, 0)),
            # bias: constant block -> VMEM-resident across all steps.
            pl.BlockSpec((1, NUM_OUTPUTS), lambda i: (0, 0)),
        ],
        out_specs=pl.BlockSpec((tb, NUM_OUTPUTS), lambda i: (i, 0)),
        compiler_params=pltpu.CompilerParams(
            dimension_semantics=("parallel",),
            vmem_limit_bytes=int(vmem_bytes)),
        cost_estimate=cost,
    )(x2d, wt, b2d)
    return out


if __name__ == "__main__":
    key = jax.random.PRNGKey(0)
    kx, kw, kb = jax.random.split(key, 3)

    # Small input consistent with 784 = 1*28*28 features.
    B, C, H, W = 2, 1, 28, 28
    x = jax.random.normal(kx, (B, C, H, W), dtype=jnp.float32)

    # Deterministic init mimicking nn.Linear default:
    # uniform(-1/sqrt(fan_in), 1/sqrt(fan_in)).
    bound = 1.0 / (NUM_INPUTS ** 0.5)
    w = jax.random.uniform(kw, (NUM_OUTPUTS, NUM_INPUTS),
                           minval=-bound, maxval=bound, dtype=jnp.float32)
    b = jax.random.uniform(kb, (NUM_OUTPUTS,),
                           minval=-bound, maxval=bound, dtype=jnp.float32)

    # Reference (plain JAX, f32).
    y_ref = x.reshape(B, -1) @ w.T + b

    # Default f32 path: parity with the PyTorch module.
    y = linear_net_forward(x, w, b)
    jax.block_until_ready(y)
    assert y.shape == (B, NUM_OUTPUTS)
    assert y.dtype == jnp.float32
    assert jnp.allclose(y, y_ref, atol=1e-5, rtol=1e-5)

    # Optional bandwidth-saving path: bf16 streaming, f32 accumulate/output.
    y_bf16 = linear_net_forward(x, w, b, compute_dtype=jnp.bfloat16)
    jax.block_until_ready(y_bf16)
    assert y_bf16.shape == (B, NUM_OUTPUTS)
    assert y_bf16.dtype == jnp.float32
    assert jnp.allclose(y_bf16, y_ref, atol=5e-2, rtol=5e-2)

    print("KERNEL_OK")
</pallas_src>

<mosaic_0001>
module attributes {stable_mosaic.version = 11 : i64} {
  func.func @_linear_kernel(%arg0: i32, %arg1: memref<8x784xf32, #tpu.memory_space<vmem>>, %arg2: memref<784x10xf32, #tpu.memory_space<vmem>>, %arg3: memref<1x10xf32, #tpu.memory_space<vmem>>, %arg4: memref<8x10xf32, #tpu.memory_space<vmem>>) attributes {dimension_semantics = [#tpu.dimension_semantics<parallel>], iteration_bounds = array<i64: 1>, scalar_prefetch = 0 : i64, scratch_operands = 0 : i64, tpu.core_type = #tpu.core_type<tc>, window_params = [{transform_indices = @transform_0, window_bounds = array<i64: 8, 784>}, {pipeline_mode = #tpu.pipeline_mode<synchronous>, transform_indices = @transform_1, window_bounds = array<i64: 784, 10>}, {pipeline_mode = #tpu.pipeline_mode<synchronous>, transform_indices = @transform_2, window_bounds = array<i64: 1, 10>}, {transform_indices = @transform_3, window_bounds = array<i64: 8, 10>}]} {
    %c0 = arith.constant 0 : index
    %c0_0 = arith.constant 0 : index
    %0 = vector.load %arg1[%c0, %c0_0] : memref<8x784xf32, #tpu.memory_space<vmem>>, vector<8x784xf32>
    %c0_1 = arith.constant 0 : index
    %c0_2 = arith.constant 0 : index
    %1 = vector.load %arg2[%c0_1, %c0_2] : memref<784x10xf32, #tpu.memory_space<vmem>>, vector<784x10xf32>
    %cst = arith.constant dense<0.000000e+00> : vector<8x10xf32>
    %2 = tpu.matmul %0, %1, %cst {dimension_numbers = #tpu.dot_dimension_numbers<[1], [0], [0], [1], [0, 0, 1, 1], [], []>} : vector<8x784xf32>, vector<784x10xf32>, vector<8x10xf32> -> vector<8x10xf32>
    %c0_3 = arith.constant 0 : index
    %c0_4 = arith.constant 0 : index
    %3 = vector.load %arg3[%c0_3, %c0_4] : memref<1x10xf32, #tpu.memory_space<vmem>>, vector<1x10xf32>
    %4 = vector.broadcast %3 : vector<1x10xf32> to vector<8x10xf32>
    %5 = arith.addf %2, %4 : vector<8x10xf32>
    %c0_5 = arith.constant 0 : index
    %c0_6 = arith.constant 0 : index
    %6 = vector.load %arg4[%c0_5, %c0_6] : memref<8x10xf32, #tpu.memory_space<vmem>>, vector<8x10xf32>
    tpu.vector_store %arg4[%c0_5, %c0_6], %5 {strides = array<i32>} : memref<8x10xf32, #tpu.memory_space<vmem>>, vector<8x10xf32>,
    return
  }
  func.func @transform_0(%arg0: i32) -> (i32, i32) {
    %c0_i32 = arith.constant 0 : i32
    %c0_i32_0 = arith.constant 0 : i32
    return %arg0, %c0_i32 : i32, i32
  }
  func.func @transform_1(%arg0: i32) -> (i32, i32) {
    %c0_i32 = arith.constant 0 : i32
    %c0_i32_0 = arith.constant 0 : i32
    %c0_i32_1 = arith.constant 0 : i32
    return %c0_i32, %c0_i32_0 : i32, i32
  }
  func.func @transform_2(%arg0: i32) -> (i32, i32) {
    %c0_i32 = arith.constant 0 : i32
    %c0_i32_0 = arith.constant 0 : i32
    %c0_i32_1 = arith.constant 0 : i32
    return %c0_i32, %c0_i32_0 : i32, i32
  }
  func.func @transform_3(%arg0: i32) -> (i32, i32) {
    %c0_i32 = arith.constant 0 : i32
    %c0_i32_0 = arith.constant 0 : i32
    return %arg0, %c0_i32 : i32, i32
  }
}

</mosaic_0001>

<bundles_post_ra>
// kernel: tpu_custom_call.1
= control target key start
LH: loop header
LB: loop body
LE: loop exit
PB: predicated region body
PF: predicated region fallthrough
CT: control target
= control target key end

     0   :  { %8 = vsyncpa [#allocation3], 0  ;;  %v671_v29 = vmov 1983009808   ;;  %v143_v31 = vlaneseq  ;;  %vm673_vm0 = vmmov 0   ;;  %vm213_vm1 = vcmask 130048   ;;  %s1039_s0 = inlined_call_operand.vmem [shape: f32[2,784], index: 0, kind: input, shape index: {}]   ;;  %s1040_s1 = inlined_call_operand.vmem [shape: f32[784,10], index: 1, kind: input, shape index: {}]   ;;  %s1041_s2 = inlined_call_operand.vmem [shape: f32[1,10], index: 2, kind: input, shape index: {}]   ;;  %s1042_s3 = inlined_call_operand.hbm [shape: f32[2,10], index: 3, kind: output, shape index: {}]  }
   0x1   :  { %v54_v0 = vld [vmem:[%s1040_s1 + $0xf8] sm:$0xff]  ;;  %v53_v2 = vld [vmem:[%s1040_s1 + $0xf0] sm:$0xff]  ;;  %v52_v6 = vld [vmem:[%s1040_s1 + $0xe8] sm:$0xff]  ;;  %v141_v30 = vunpack.c.l.s4 %v671_v29  ;;  %v672_v29 = vmov 0.0   ;;  %vm496_vm2 = vcmask 80896  }
   0x2   :  { %v38_v1 = vld [vmem:[%s1040_s1 + $0x78] sm:$0xff]  ;;  %516 = vmatprep.subr.mxu0 %v54_v0  ;;  %v37_v4 = vld [vmem:[%s1040_s1 + $0x70] sm:$0xff]  ;;  %v36_v8 = vld [vmem:[%s1040_s1 + $0x68] sm:$0xff]  ;;  %v144_v41 = vshrl.u32 %v143_v31, 7 }
   0x3   :  { %v86_v3 = vld [vmem:[%s1040_s1 + $0x1f8] sm:$0xff]  ;;  %517 = vmatpush3.msra.mxu0 %v38_v1  ;;  %v85_v7 = vld [vmem:[%s1040_s1 + $0x1f0] sm:$0xff]  ;;  %v51_v10 = vld [vmem:[%s1040_s1 + $0xe0] sm:$0xff]  ;;  %v142_v40 = vunpack.c.0.s8 %v141_v30 }
   0x4   :  { %551 = vmatprep.subr.mxu1 %v86_v3  ;;  %v70_v5 = vld [vmem:[%s1040_s1 + $0x178] sm:$0xff]  ;;  %518 = vmatprep.subr.mxu0 %v53_v2  ;;  %v69_v9 = vld [vmem:[%s1040_s1 + $0x170] sm:$0xff]  ;;  %v84_v11 = vld [vmem:[%s1040_s1 + $0x1e8] sm:$0xff] }
   0x5   :  { %552 = vmatpush3.msra.mxu1 %v70_v5  ;;  %519 = vmatpush3.msra.mxu0 %v37_v4  ;;  %v68_v12 = vld [vmem:[%s1040_s1 + $0x168] sm:$0xff]  ;;  %v35_v13 = vld [vmem:[%s1040_s1 + $0x60] sm:$0xff]  ;;  %v50_v15 = vld [vmem:[%s1040_s1 + $0xd8] sm:$0xff]  ;;  %v841_v53 = vsub.s32 %v142_v40, %v144_v41 }
   0x6   :  { %553 = vmatprep.subr.mxu1 %v85_v7  ;;  %520 = vmatprep.subr.mxu0 %v52_v6  ;;  %v83_v14 = vld [vmem:[%s1040_s1 + $0x1e0] sm:$0xff]  ;;  %v34_v17 = vld [vmem:[%s1040_s1 + $0x58] sm:$0xff]  ;;  %v49_v19 = vld [vmem:[%s1040_s1 + $0xd0] sm:$0xff] }
   0x7   :  { %554 = vmatpush3.msra.mxu1 %v69_v9  ;;  %521 = vmatpush3.msra.mxu0 %v36_v8  ;;  %v67_v16 = vld [vmem:[%s1040_s1 + $0x160] sm:$0xff]  ;;  %v82_v18 = vld [vmem:[%s1040_s1 + $0x1d8] sm:$0xff]  ;;  %v33_v21 = vld [vmem:[%s1040_s1 + $0x50] sm:$0xff] }
   0x8   :  { %555 = vmatprep.subr.mxu1 %v84_v11  ;;  %522 = vmatprep.subr.mxu0 %v51_v10  ;;  %v66_v20 = vld [vmem:[%s1040_s1 + $0x158] sm:$0xff]  ;;  %v81_v22 = vld [vmem:[%s1040_s1 + $0x1d0] sm:$0xff]  ;;  %v48_v23 = vld [vmem:[%s1040_s1 + $0xc8] sm:$0xff] }
   0x9   :  { %556 = vmatpush3.msra.mxu1 %v68_v12  ;;  %523 = vmatpush3.msra.mxu0 %v35_v13  ;;  %v65_v24 = vld [vmem:[%s1040_s1 + $0x150] sm:$0xff]  ;;  %v32_v25 = vld [vmem:[%s1040_s1 + $0x48] sm:$0xff]  ;;  %v47_v27 = vld [vmem:[%s1040_s1 + $0xc0] sm:$0xff] }
   0xa   :  { %557 = vmatprep.subr.mxu1 %v83_v14  ;;  %524 = vmatprep.subr.mxu0 %v50_v15  ;;  %v80_v26 = vld [vmem:[%s1040_s1 + $0x1c8] sm:$0xff]  ;;  %v31_v32 = vld [vmem:[%s1040_s1 + $0x40] sm:$0xff]  ;;  %v46_v34 = vld [vmem:[%s1040_s1 + $0xb8] sm:$0xff] }
   0xb   :  { %558 = vmatpush3.msra.mxu1 %v67_v16  ;;  %525 = vmatpush3.msra.mxu0 %v34_v17  ;;  %v64_v28 = vld [vmem:[%s1040_s1 + $0x148] sm:$0xff]  ;;  %v79_v33 = vld [vmem:[%s1040_s1 + $0x1c0] sm:$0xff]  ;;  %v30_v36 = vld [vmem:[%s1040_s1 + $0x38] sm:$0xff] }
   0xc   :  { %559 = vmatprep.subr.mxu1 %v82_v18  ;;  %526 = vmatprep.subr.mxu0 %v49_v19  ;;  %v63_v35 = vld [vmem:[%s1040_s1 + $0x140] sm:$0xff]  ;;  %v78_v37 = vld [vmem:[%s1040_s1 + $0x1b8] sm:$0xff]  ;;  %v45_v38 = vld [vmem:[%s1040_s1 + $0xb0] sm:$0xff] }
   0xd   :  { %560 = vmatpush3.msra.mxu1 %v66_v20  ;;  %527 = vmatpush3.msra.mxu0 %v33_v21  ;;  %v62_v39 = vld [vmem:[%s1040_s1 + $0x138] sm:$0xff]  ;;  %v29_v42 = vld [vmem:[%s1040_s1 + $0x30] sm:$0xff]  ;;  %v44_v43 = vld [vmem:[%s1040_s1 + $0xa8] sm:$0xff] }
   0xe   :  { %561 = vmatprep.subr.mxu1 %v81_v22  ;;  %528 = vmatprep.subr.mxu0 %v48_v23  ;;  %v77_v44 = vld [vmem:[%s1040_s1 + $0x1b0] sm:$0xff]  ;;  %v28_v45 = vld [vmem:[%s1040_s1 + $0x28] sm:$0xff]  ;;  %v43_v47 = vld [vmem:[%s1040_s1 + $0xa0] sm:$0xff] }
   0xf   :  { %562 = vmatpush3.msra.mxu1 %v65_v24  ;;  %529 = vmatpush3.msra.mxu0 %v32_v25  ;;  %v61_v46 = vld [vmem:[%s1040_s1 + $0x130] sm:$0xff]  ;;  %v76_v48 = vld [vmem:[%s1040_s1 + $0x1a8] sm:$0xff]  ;;  %v27_v49 = vld [vmem:[%s1040_s1 + $0x20] sm:$0xff] }
  0x10   :  { %563 = vmatprep.subr.mxu1 %v80_v26  ;;  %530 = vmatprep.subr.mxu0 %v47_v27  ;;  %v60_v50 = vld [vmem:[%s1040_s1 + $0x128] sm:$0xff]  ;;  %v42_v51 = vld [vmem:[%s1040_s1 + $0x98] sm:$0xff]  ;;  %v75_v52 = vld [vmem:[%s1040_s1 + $0x1a0] sm:$0xff] }
  0x11   :  { %564 = vmatpush3.msra.mxu1 %v64_v28  ;;  %531 = vmatpush3.msra.mxu0 %v31_v32  ;;  %v59_v54 = vld [vmem:[%s1040_s1 + $0x120] sm:$0xff]  ;;  %v639_v56 = vld [vmem:[%s1039_s0 + $0x1c] ss:$14 sps:$4 sm:$0xff]   ;;  %v41_v58 = vld [vmem:[%s1040_s1 + $0x90] sm:$0xff] }
  0x12   :  { %565 = vmatprep.subr.mxu1 %v79_v33  ;;  %532 = vmatprep.subr.mxu0 %v46_v34  ;;  %v637_v55 = vld [vmem:[%s1039_s0] ss:$14 sps:$4 sm:$0xff]   ;;  %v26_v57 = vld [vmem:[%s1040_s1 + $0x18] sm:$0xff]  ;;  %v160_v62 = vrot.slane %v639_v56, %v841_v53  ;;  %v641_v63 = vld [vmem:[%s1039_s0 + $0x4] ss:$14 sps:$4 sm:$0xff]  }
  0x13   :  { %566 = vmatpush3.msra.mxu1 %v63_v35  ;;  %533 = vmatpush3.msra.mxu0 %v30_v36  ;;  %v74_v59 = vld [vmem:[%s1040_s1 + $0x198] sm:$0xff]  ;;  %v146_v61 = vrot.slane %v637_v55, %v841_v53  ;;  %v642_v0 = vld [vmem:[%s1039_s0 + $0x20] ss:$14 sps:$4 sm:$0xff]   ;;  %v153_v8 = vrot.slane %v641_v63, %v841_v53  ;;  %v646_v26 = vld [vmem:[%s1039_s0 + $0x24] ss:$14 sps:$4 sm:$0xff]  }
  0x14   :  { %567 = vmatprep.subr.mxu1 %v78_v37  ;;  %534 = vmatprep.subr.mxu0 %v45_v38  ;;  %v58_v60 = vld [vmem:[%s1040_s1 + $0x118] sm:$0xff]  ;;  %v25_v1 = vld [vmem:[%s1040_s1 + $0x10] sm:$0xff]  ;;  %v40_v3 = vld [vmem:[%s1040_s1 + $0x88] sm:$0xff]  ;;  %v167_v9 = vrot.slane %v642_v0, %v841_v53  ;;  %v947_v32 = vrot.slane %v646_v26, %v841_v53 }
  0x15   :  { %568 = vmatpush3.msra.mxu1 %v62_v39  ;;  %535 = vmatpush3.msra.mxu0 %v29_v42  ;;  %v73_v2 = vld [vmem:[%s1040_s1 + $0x190] sm:$0xff]  ;;  %v24_v5 = vld [vmem:[%s1040_s1 + $0x8] sm:$0xff]  ;;  %v169_v7 = vcombine.high %v146_v61, %v160_v62  ;;  %v39_v10 = vld [vmem:[%s1040_s1 + $0x80] sm:$0xff]  ;;  %v168_v13 = vcombine.low %v146_v61, %v160_v62 }
  0x16   :  { %569 = vmatprep.subr.mxu1 %v77_v44  ;;  %536 = vmatprep.subr.mxu0 %v44_v43  ;;  %v57_v4 = vld [vmem:[%s1040_s1 + $0x110] sm:$0xff]  ;;  %v72_v6 = vld [vmem:[%s1040_s1 + $0x188] sm:$0xff]  ;;  %v23_v11 = vld [vmem:[%s1040_s1] sm:$0xff]  ;;  %v171_v17 = vcombine.high %v153_v8, %v167_v9  ;;  %v170_v19 = vcombine.low %v153_v8, %v167_v9 }
  0x17   :  { %570 = vmatpush3.msra.mxu1 %v61_v46  ;;  %537 = vmatpush3.msra.mxu0 %v28_v45  ;;  %v56_v12 = vld [vmem:[%s1040_s1 + $0x108] sm:$0xff]  ;;  %v71_v14 = vld [vmem:[%s1040_s1 + $0x180] sm:$0xff]  ;;  %v118_v15 = vld [vmem:[%s1040_s1 + $0x2f8] sm:$0xff] }
  0x18   :  { %571 = vmatprep.subr.mxu1 %v76_v48  ;;  %538 = vmatprep.subr.mxu0 %v43_v47  ;;  %v55_v16 = vld [vmem:[%s1040_s1 + $0x100] sm:$0xff]  ;;  %v102_v18 = vld [vmem:[%s1040_s1 + $0x278] sm:$0xff]  ;;  %v117_v20 = vld [vmem:[%s1040_s1 + $0x2f0] sm:$0xff] }
  0x19   :  { %572 = vmatpush3.msra.mxu1 %v60_v50  ;;  %539 = vmatpush3.msra.mxu0 %v27_v49  ;;  %v101_v21 = vld [vmem:[%s1040_s1 + $0x270] sm:$0xff]  ;;  %v116_v22 = vld [vmem:[%s1040_s1 + $0x2e8] sm:$0xff]  ;;  %v115_v24 = vld [vmem:[%s1040_s1 + $0x2e0] sm:$0xff] }
  0x1a   :  { %573 = vmatprep.subr.mxu1 %v75_v52  ;;  %540 = vmatprep.subr.mxu0 %v42_v51  ;;  %v100_v23 = vld [vmem:[%s1040_s1 + $0x268] sm:$0xff]  ;;  %v99_v30 = vld [vmem:[%s1040_s1 + $0x260] sm:$0xff]  ;;  %v114_v35 = vld [vmem:[%s1040_s1 + $0x2d8] sm:$0xff] }
  0x1b   :  { %574 = vmatpush3.msra.mxu1 %v59_v54  ;;  %541 = vmatpush3.msra.mxu0 %v26_v57  ;;  %v643_v25 = vld [vmem:[%s1039_s0 + $0x8] ss:$14 sps:$4 sm:$0xff]   ;;  %v645_v27 = vld [vmem:[%s1039_s0 + $0xc] ss:$14 sps:$4 sm:$0x33]   ;;  %v119_v34 = vld [vmem:[%s1040_s1 + $0x300] sm:$0xff] }
  0x1c   :  { %575 = vmatprep.subr.mxu1 %v74_v59  ;;  %542 = vmatprep.subr.mxu0 %v41_v58  ;;  %v648_v28 = vld [vmem:[%s1039_s0 + $0x28] ss:$14 sps:$4 sm:$0x33]   ;;  %v944_v31 = vrot.slane %v643_v25, %v841_v53  ;;  %v189_v36 = vrot.slane %v645_v27, %v841_v53  ;;  %v98_v38 = vld [vmem:[%s1040_s1 + $0x258] sm:$0xff]  ;;  %v111_v45 = vld [vmem:[%s1040_s1 + $0x2c0] sm:$0xff] }
  0x1d   :  { %576 = vmatpush3.msra.mxu1 %v58_v60  ;;  %543 = vmatpush3.msra.mxu0 %v25_v1  ;;  %v120_v33 = vld [vmem:[%s1040_s1 + $0x308] sm:$0xff]  ;;  %v203_v37 = vrot.slane %v648_v28, %v841_v53  ;;  %v113_v40 = vld [vmem:[%s1040_s1 + $0x2d0] sm:$0xff]  ;;  %v95_v46 = vld [vmem:[%s1040_s1 + $0x240] sm:$0xff] }
  0x1e   :  { %577 = vmatprep.subr.mxu1 %v73_v2  ;;  %544 = vmatprep.subr.mxu0 %v40_v3  ;;  %v205_v39 = vcombine.high %v944_v31, %v947_v32  ;;  %v97_v42 = vld [vmem:[%s1040_s1 + $0x250] sm:$0xff]  ;;  %v112_v43 = vld [vmem:[%s1040_s1 + $0x2c8] sm:$0xff]  ;;  %v110_v47 = vld [vmem:[%s1040_s1 + $0x2b8] sm:$0xff]  ;;  %v204_v63 = vcombine.low %v944_v31, %v947_v32 }
  0x1f   :  { %578 = vmatpush3.msra.mxu1 %v57_v4  ;;  %545 = vmatpush3.msra.mxu0 %v24_v5  ;;  %v206_v41 = vcombine.low %v189_v36, %v203_v37  ;;  %v96_v44 = vld [vmem:[%s1040_s1 + $0x248] sm:$0xff]  ;;  %v94_v48 = vld [vmem:[%s1040_s1 + $0x238] sm:$0xff]  ;;  %v109_v49 = vld [vmem:[%s1040_s1 + $0x2b0] sm:$0xff] }
  0x20   :  { %579 = vmatprep.subr.mxu1 %v72_v6  ;;  %546 = vmatprep.subr.mxu0 %v39_v10  ;;  %v93_v50 = vld [vmem:[%s1040_s1 + $0x230] sm:$0xff]  ;;  %v108_v51 = vld [vmem:[%s1040_s1 + $0x2a8] sm:$0xff]  ;;  %v107_v53 = vld [vmem:[%s1040_s1 + $0x2a0] sm:$0xff] }
  0x21   :  { %280 = vmatprep.mubr.f32.mxu0 %v169_v7  ;;  %547 = vmatpush3.msra.mxu0 %v23_v11  ;;  %v92_v52 = vld [vmem:[%s1040_s1 + $0x228] sm:$0xff]  ;;  %v91_v54 = vld [vmem:[%s1040_s1 + $0x220] sm:$0xff]  ;;  %v106_v55 = vld [vmem:[%s1040_s1 + $0x298] sm:$0xff] }
  0x22   :  { %580 = vmatpush3.msra.mxu1 %v56_v12  ;;  %281 = vmatmul.mubr.f32.vlgmr.msra.gmra.mxu0 %v168_v13  ;;  %v90_v56 = vld [vmem:[%s1040_s1 + $0x218] sm:$0xff]  ;;  %v105_v57 = vld [vmem:[%s1040_s1 + $0x290] sm:$0xff]  ;;  %v104_v59 = vld [vmem:[%s1040_s1 + $0x288] sm:$0xff] }
  0x23   :  { %581 = vmatprep.subr.mxu1 %v71_v14  ;;  %586 = vmatprep.subr.mxu0 %v118_v15  ;;  %v89_v58 = vld [vmem:[%s1040_s1 + $0x210] sm:$0xff]  ;;  %v88_v60 = vld [vmem:[%s1040_s1 + $0x208] sm:$0xff]  ;;  %v103_v61 = vld [vmem:[%s1040_s1 + $0x280] sm:$0xff] }
  0x24   :  { %582 = vmatpush3.msra.mxu1 %v55_v16  ;;  %350 = vmatprep.mubr.f32.mxu1 %v171_v17  ;;  %v87_v62 = vld [vmem:[%s1040_s1 + $0x200] sm:$0xff] }
  0x25   :  { %587 = vmatpush3.msra.mxu0 %v102_v18  ;;  %351 = vmatmul.mubr.f32.vlgmr.msra.gmra.mxu1 %v170_v19  ;;  %v514_v7 = vld [vmem:[%s1041_s2] ss:$0 sm:$0xff] }
  0x26   :  { %588 = vmatprep.subr.mxu0 %v117_v20  ;;  %624 = vmatprep.subr.mxu1 %v672_v29 }
  0x27   :  { %589 = vmatpush3.msra.mxu0 %v101_v21  ;;  %628 = vmatprep.mubr.msk.f32.mxu1 %vm673_vm0, %v672_v29 }
  0x28   :  { %590 = vmatprep.subr.mxu0 %v116_v22  ;;  %625 = vmatpush3.msra.mxu1 %v120_v33 }
  0x29   :  { %591 = vmatpush3.msra.mxu0 %v100_v23  ;;  %626 = vmatprep.subr.mxu1 %v672_v29 }
  0x2a   :  { %592 = vmatprep.subr.mxu0 %v115_v24  ;;  %627 = vmatpush3.msra.mxu1 %v119_v34 }
  0x2b   :  { %593 = vmatpush3.msra.mxu0 %v99_v30  ;;  %420 = vmatprep.mubr.f32.mxu0 %v205_v39 }
  0x2c   :  { %594 = vmatprep.subr.mxu0 %v114_v35  ;;  %629 = vmatmul.mubr.msk.f32.vlgmr.msra.gmra.mxu1 %vm213_vm1, %v206_v41 }
  0x2d   :  { %595 = vmatpush3.msra.mxu0 %v98_v38 }
  0x2e   :  { %596 = vmatprep.subr.mxu0 %v113_v40 }
  0x2f   :  { %597 = vmatpush3.msra.mxu0 %v97_v42 }
  0x30   :  { %598 = vmatprep.subr.mxu0 %v112_v43 }
  0x31   :  { %599 = vmatpush3.msra.mxu0 %v96_v44 }
  0x32   :  { %600 = vmatprep.subr.mxu0 %v111_v45 }
  0x33   :  { %601 = vmatpush3.msra.mxu0 %v95_v46 }
  0x34   :  { %602 = vmatprep.subr.mxu0 %v110_v47 }
  0x35   :  { %603 = vmatpush3.msra.mxu0 %v94_v48 }
  0x36   :  { %604 = vmatprep.subr.mxu0 %v109_v49 }
  0x37   :  { %605 = vmatpush3.msra.mxu0 %v93_v50 }
  0x38   :  { %606 = vmatprep.subr.mxu0 %v108_v51 }
  0x39   :  { %607 = vmatpush3.msra.mxu0 %v92_v52 }
  0x3a   :  { %608 = vmatprep.subr.mxu0 %v107_v53 }
  0x3b   :  { %609 = vmatpush3.msra.mxu0 %v91_v54 }
  0x3c   :  { %610 = vmatprep.subr.mxu0 %v106_v55 }
  0x3d   :  { %611 = vmatpush3.msra.mxu0 %v90_v56 }
  0x3e   :  { %612 = vmatprep.subr.mxu0 %v105_v57 }
  0x3f   :  { %613 = vmatpush3.msra.mxu0 %v89_v58 }
  0x40   :  { %614 = vmatprep.subr.mxu0 %v104_v59 }
  0x41   :  { %615 = vmatpush3.msra.mxu0 %v88_v60 }
  0x42   :  { %616 = vmatprep.subr.mxu0 %v103_v61 }
  0x43   :  { %617 = vmatpush3.msra.mxu0 %v87_v62 }
  0x44   :  { %421 = vmatmul.mubr.f32.vlgmr.msra.gmra.mxu0 %v204_v63 }
  0xe2   :  { %v548_v4 = vpop.f32.mrf.mxu0 }
  0xe4   :  { %v549_v5 = vpop.f32.mrf.mxu0 }
  0xe5   :  { %v583_v0 = vpop.f32.mrf.mxu1  ;;  %v550_v6 = vadd.f32 %v549_v5, %v548_v4 }
  0xe7   :  { %v584_v1 = vpop.f32.mrf.mxu1  ;;  %v283_v8 = vadd.f32 %v550_v6, %v514_v7 }
  0xe8   :  { %v585_v9 = vadd.f32 %v584_v1, %v583_v0 }
  0xea   :  { %v353_v12 = vadd.f32 %v585_v9, %v283_v8 }
  0xec   :  { %v492_v2 = vpop.f32.mrf.mxu1 }
  0xee   :  { %v630_v3 = vpop.f32.mrf.mxu1 }
 0x104   :  { %v618_v10 = vpop.f32.mrf.mxu0 }
 0x106   :  { %v619_v11 = vpop.f32.mrf.mxu0 }
 0x107   :  { %v620_v13 = vadd.f32 %v619_v11, %v618_v10 }
 0x109   :  { %v423_v14 = vadd.f32 %v620_v13, %v353_v12 }
 0x10b   :  { %v493_v15 = vadd.f32 %v492_v2, %v423_v14 }
 0x10d   :  { %497 = vst.msk [vmem:[#allocation2] sm:$0xff] %vm496_vm2, %v493_v15 }
 0x10e   :  { %502 = vsyncadd [#allocation3], 96  ;;  %s674_s1 = smov [#allocation2]  }
 0x10f   :  { %s503_s8 = sshll.u32 %s674_s1, 4  ;;  %s504_s8 = int_to_ptr.vmem [resolvable:$true] %s503_s8 }
 0x110   :  { %s649_s9 = scalar_lea.vmem %s504_s8, 32  ;;  %s653_s10 = scalar_lea.vmem %s504_s8, 128 }
 0x111   :  { %p650_p0 = scmp.ne.s32.totalorder %s504_s8, %s649_s9  ;;  %p654_p1 = scmp.lt.s32.totalorder %s504_s8, %s504_s8 }
 0x112   :  { %p655_p2 = scmp.lt.s32.totalorder %s653_s10, %s649_s9 }
 0x114   :  { %p656_p3 = por %p655_p2, %p654_p1 }
 0x116   :  { %p657_p4 = pnand %p656_p3, %p650_p0 }
 0x118   :  { %660 = shalt.err (!%p657_p4)
}
 0x119   :  { %s675_s2 = smov 32   ;;  %s676_s11 = smov 2  }
 0x11a   :  { %509 = dma.vmem_to_hbm [thread:$0]  %s504_s8, 32, %s1042_s3, [#allocation3], %s675_s2, %s675_s2, %s676_s11  }
 0x11b   :  { %669 = dma.done.wait [#allocation3], 128  }
 0x11c   :  { %670 = vsyncadd [#allocation3], 4294967168 }
 0x11d   :  { %513 = vsyncpa [#allocation3], 1 }

</bundles_post_ra>
